<compile_context>
chip_gen: v7x
topology: tpu7x:2x2x1
jax: 0.10.0
libtpu: 0.0.40
codegen_flags: <defaults>
</compile_context>

<pallas_src>
import jax
import jax.numpy as jnp
from jax.experimental import pallas as pl
from jax.experimental.pallas import tpu as pltpu


BN_EPS = 1e-5


def _round_up(x, m):
    return (x + m - 1) // m * m


def _mxu_align():
    """256-wide panels for the v6e/v7x 2x256x256 MXUs; 128 on v5e and older."""
    try:
        kind = jax.devices()[0].device_kind.lower()
    except Exception:
        return 128
    for old in ("v2", "v3", "v4", "v5"):
        if old in kind:
            return 128
    return 256


def _vmem_budget_bytes():
    """Scoped-VMEM cap: ~75% of per-core VMEM, clamped to 96 MiB.

    v5e/v6e (128 MiB) -> 96 MiB; v7x (64 MiB per TC) -> 48 MiB.
    """
    try:
        cap = int(pltpu.get_tpu_info().vmem_capacity_bytes)
    except Exception:
        cap = 64 * 1024 * 1024          # conservative fallback (safe on v7x)
    return min(int(cap) * 3 // 4, 96 * 1024 * 1024)


def _choose_tile_m(m, k_pad, f_pad, out_itemsize, budget):
    """Largest power-of-two M tile whose double-buffered working set fits."""
    m_cap = _round_up(m, 16)
    for tile in (1024, 512, 256, 128, 64, 32, 16):
        if tile > m_cap and tile != 16:
            continue
        pass1 = (2 * tile * k_pad * 2        # A tiles (bf16, double-buffered)
                 + 2 * k_pad * f_pad * 2     # resident W (bf16)
                 + 2 * tile * f_pad * 2      # y tiles out (bf16)
                 + 2 * 2 * f_pad * 4         # per-tile stats out
                 + 2 * f_pad * 4)            # bias
        pass2 = (2 * tile * f_pad * 2                 # y tiles in (bf16)
                 + 2 * tile * f_pad * out_itemsize    # output tiles
                 + 2 * 2 * f_pad * 4)                 # scale/shift
        if max(pass1, pass2) <= budget:
            return tile
    return 16


def conv_stats_kernel(a_ref, w_ref, b_ref, y_ref, stats_ref):
    """One M-tile: acc = A @ W (bf16 in, f32 acc); y = acc + bias stored bf16.

    Per-tile per-channel partial sum / sum-of-squares are taken on the
    PRE-BIAS accumulator (shifted sums: better conditioning, and zero-padded M
    rows contribute exactly zero, so no row masking is needed)."""
    acc = jnp.dot(a_ref[...], w_ref[...], preferred_element_type=jnp.float32)
    y_ref[...] = (acc + b_ref[...]).astype(y_ref.dtype)

    s = jnp.sum(acc, axis=0, keepdims=True)            # (1, F_pad) f32
    ss = jnp.sum(acc * acc, axis=0, keepdims=True)     # (1, F_pad) f32
    stats_ref[:, 0:1, :] = s[:, None, :]
    stats_ref[:, 1:2, :] = ss[:, None, :]


def bn_relu_kernel(y_ref, ss_ref, o_ref):
    """One M-tile: out = max(y * scale + shift, 0); scale/shift stacked (2,F)."""
    ss = ss_ref[...]
    scale = ss[0:1, :]
    shift = ss[1:2, :]
    y = y_ref[...].astype(jnp.float32)                 # math in f32 (v5e VPU)
    o_ref[...] = jnp.maximum(y * scale + shift, 0.0).astype(o_ref.dtype)


def im2col_nhwc_bf16(x_nhwc, kh, kw, padding, stride, ho, wo, k_pad):
    """Build the (M, K_pad) im2col matrix once, in bf16, with K lane-padding
    folded into the single concatenate."""
    n, h, w, c = x_nhwc.shape
    xp = jnp.pad(x_nhwc, ((0, 0), (padding, padding), (padding, padding), (0, 0)))
    cols = []
    for i in range(kh):
        for j in range(kw):
            cols.append(xp[:, i:i + stride * ho:stride, j:j + stride * wo:stride, :])
    k = kh * kw * c
    if k_pad > k:
        cols.append(jnp.zeros((n, ho, wo, k_pad - k), x_nhwc.dtype))
    a = jnp.concatenate(cols, axis=-1)                 # (N, Ho, Wo, K_pad)
    return a.reshape(n * ho * wo, k_pad)


def conv_layer_forward(x_nchw, weight, bias, gamma, beta,
                       padding=1, stride=1, tile_m=None):
    """x_nchw: (N, C, H, W); weight: (F, C, kh, kw) PyTorch layout."""
    n, c, h, w = x_nchw.shape
    f, _, kh, kw = weight.shape
    out_dtype = x_nchw.dtype
    out_itemsize = jnp.dtype(out_dtype).itemsize

    ho = (h + 2 * padding - kh) // stride + 1
    wo = (w + 2 * padding - kw) // stride + 1
    m = n * ho * wo
    k = kh * kw * c

    align = _mxu_align()
    k_pad = _round_up(k, align if k > 128 else 128)
    f_pad = _round_up(f, align if f > 128 else 128)

    budget = _vmem_budget_bytes()
    if tile_m is None:
        tile_m = _choose_tile_m(m, k_pad, f_pad, out_itemsize, budget)
    tile_m = max(16, _round_up(min(int(tile_m), _round_up(m, 16)), 16))
    m_pad = _round_up(m, tile_m)
    n_tiles = m_pad // tile_m

    # ---- XLA-side layout plumbing: NHWC -> bf16 im2col (built once) --------
    x_nhwc = jnp.transpose(x_nchw, (0, 2, 3, 1)).astype(jnp.bfloat16)
    a = im2col_nhwc_bf16(x_nhwc, kh, kw, padding, stride, ho, wo, k_pad)
    if m_pad != m:
        a = jnp.pad(a, ((0, m_pad - m), (0, 0)))       # zero rows -> zero acc

    w_mat = jnp.transpose(weight, (2, 3, 1, 0)).reshape(k, f).astype(jnp.bfloat16)
    w_p = jnp.zeros((k_pad, f_pad), jnp.bfloat16).at[:k, :f].set(w_mat)
    b_p = jnp.zeros((1, f_pad), jnp.float32).at[0, :f].set(bias.astype(jnp.float32))

    cost1 = pl.CostEstimate(
        flops=2 * m_pad * k_pad * f_pad,
        transcendentals=0,
        bytes_accessed=(m_pad * k_pad * 2 + k_pad * f_pad * 2 + f_pad * 4
                        + m_pad * f_pad * 2 + n_tiles * 2 * f_pad * 4))

    # ---- Pass 1: conv + bias + per-tile BN partial sums --------------------
    y, stats = pl.pallas_call(
        conv_stats_kernel,
        grid=(n_tiles,),
        in_specs=[
            pl.BlockSpec((tile_m, k_pad), lambda i: (i, 0)),   # A tile (bf16)
            pl.BlockSpec((k_pad, f_pad), lambda i: (0, 0)),    # W resident
            pl.BlockSpec((1, f_pad), lambda i: (0, 0)),        # bias resident
        ],
        out_specs=(
            pl.BlockSpec((tile_m, f_pad), lambda i: (i, 0)),   # y tile (bf16)
            pl.BlockSpec((1, 2, f_pad), lambda i: (i, 0, 0)),  # per-tile stats
        ),
        out_shape=(
            jax.ShapeDtypeStruct((m_pad, f_pad), jnp.bfloat16),
            jax.ShapeDtypeStruct((n_tiles, 2, f_pad), jnp.float32),
        ),
        compiler_params=pltpu.CompilerParams(
            dimension_semantics=("parallel",),
            vmem_limit_bytes=budget),
        cost_estimate=cost1,
    )(a, w_p, b_p)

    # ---- Tiny per-channel reduction + BN coefficients (plain JAX, f32) -----
    totals = jnp.sum(stats, axis=0)                    # (2, F_pad)
    mean_acc = totals[0] / m                           # pre-bias mean
    var = jnp.maximum(totals[1] / m - mean_acc * mean_acc, 0.0)
    inv = jax.lax.rsqrt(var + BN_EPS)
    g_p = jnp.zeros((f_pad,), jnp.float32).at[:f].set(gamma.astype(jnp.float32))
    be_p = jnp.zeros((f_pad,), jnp.float32).at[:f].set(beta.astype(jnp.float32))
    scale = g_p * inv
    mean_y = mean_acc + b_p[0]                         # add conv bias back
    shift = be_p - mean_y * scale
    scale_shift = jnp.stack([scale, shift], axis=0)    # (2, F_pad)

    # ---- Pass 2: normalize + affine + ReLU, final dtype stores -------------
    cost2 = pl.CostEstimate(
        flops=3 * m_pad * f_pad,
        transcendentals=0,
        bytes_accessed=(m_pad * f_pad * 2 + 2 * f_pad * 4
                        + m_pad * f_pad * out_itemsize))

    aliases = {0: 0} if jnp.dtype(out_dtype) == jnp.dtype(jnp.bfloat16) else {}
    out_mat = pl.pallas_call(
        bn_relu_kernel,
        grid=(n_tiles,),
        in_specs=[
            pl.BlockSpec((tile_m, f_pad), lambda i: (i, 0)),
            pl.BlockSpec((2, f_pad), lambda i: (0, 0)),
        ],
        out_specs=pl.BlockSpec((tile_m, f_pad), lambda i: (i, 0)),
        out_shape=jax.ShapeDtypeStruct((m_pad, f_pad), out_dtype),
        compiler_params=pltpu.CompilerParams(
            dimension_semantics=("parallel",),
            vmem_limit_bytes=budget),
        cost_estimate=cost2,
        input_output_aliases=aliases,
    )(y, scale_shift)

    out = out_mat[:m, :f].reshape(n, ho, wo, f)
    return jnp.transpose(out, (0, 3, 1, 2))            # NCHW, already out_dtype


def reference_forward(x_nchw, weight, bias, gamma, beta, padding=1, stride=1):
    """Pure-JAX f32 reference (conv + training-mode BN + ReLU)."""
    y = jax.lax.conv_general_dilated(
        x_nchw.astype(jnp.float32), weight.astype(jnp.float32),
        window_strides=(stride, stride),
        padding=[(padding, padding), (padding, padding)],
        dimension_numbers=("NCHW", "OIHW", "NCHW"))
    y = y + bias.reshape(1, -1, 1, 1)
    mean = jnp.mean(y, axis=(0, 2, 3), keepdims=True)
    var = jnp.mean((y - mean) ** 2, axis=(0, 2, 3), keepdims=True)
    y = (y - mean) * jax.lax.rsqrt(var + BN_EPS)
    y = y * gamma.reshape(1, -1, 1, 1) + beta.reshape(1, -1, 1, 1)
    return jnp.maximum(y, 0.0)


if __name__ == "__main__":
    # Shapes consistent with ConvLayer(in_channels=4, features=8)
    N, C, H, W = 2, 4, 16, 16
    F, K = 8, 3

    key = jax.random.PRNGKey(0)
    k_x, k_w, k_b = jax.random.split(key, 3)
    x = jax.random.normal(k_x, (N, C, H, W), dtype=jnp.float32)
    weight = 0.1 * jax.random.normal(k_w, (F, C, K, K), dtype=jnp.float32)
    bias = 0.1 * jax.random.normal(k_b, (F,), dtype=jnp.float32)
    gamma = jnp.ones((F,), dtype=jnp.float32)   # PyTorch BatchNorm2d default init
    beta = jnp.zeros((F,), dtype=jnp.float32)

    ref = jax.block_until_ready(reference_forward(x, weight, bias, gamma, beta))

    # Run twice: auto tile (even M tiling) and a forced ragged tiling (M padded
    # up, exercising the zero-row / stats path). Tolerance reflects bf16 matmul
    # inputs + bf16 y round-trip (f32 accumulation and f32 statistics).
    for tm in (None, 192):
        out = conv_layer_forward(x, weight, bias, gamma, beta,
                                 padding=1, stride=1, tile_m=tm)
        out = jax.block_until_ready(out)
        assert out.shape == (N, F, H, W)
        err = float(jnp.max(jnp.abs(out - ref)))
        assert err < 5e-2, f"mismatch vs reference (tile_m={tm}, err={err})"

    print("KERNEL_OK")
</pallas_src>

<mosaic_0001>
module attributes {stable_mosaic.version = 11 : i64} {
  func.func @conv_stats_kernel(%arg0: i32, %arg1: memref<512x128xbf16, #tpu.memory_space<vmem>>, %arg2: memref<128x128xbf16, #tpu.memory_space<vmem>>, %arg3: memref<1x128xf32, #tpu.memory_space<vmem>>, %arg4: memref<512x128xbf16, #tpu.memory_space<vmem>>, %arg5: memref<1x2x128xf32, #tpu.memory_space<vmem>>) attributes {dimension_semantics = [#tpu.dimension_semantics<parallel>], iteration_bounds = array<i64: 1>, scalar_prefetch = 0 : i64, scratch_operands = 0 : i64, tpu.core_type = #tpu.core_type<tc>, window_params = [{transform_indices = @transform_0, window_bounds = array<i64: 512, 128>}, {pipeline_mode = #tpu.pipeline_mode<synchronous>, transform_indices = @transform_1, window_bounds = array<i64: 128, 128>}, {pipeline_mode = #tpu.pipeline_mode<synchronous>, transform_indices = @transform_2, window_bounds = array<i64: 1, 128>}, {transform_indices = @transform_3, window_bounds = array<i64: 512, 128>}, {transform_indices = @transform_4, window_bounds = array<i64: 1, 2, 128>}]} {
    %c0 = arith.constant 0 : index
    %c0_0 = arith.constant 0 : index
    %0 = vector.load %arg1[%c0, %c0_0] : memref<512x128xbf16, #tpu.memory_space<vmem>>, vector<512x128xbf16>
    %c0_1 = arith.constant 0 : index
    %c0_2 = arith.constant 0 : index
    %1 = vector.load %arg2[%c0_1, %c0_2] : memref<128x128xbf16, #tpu.memory_space<vmem>>, vector<128x128xbf16>
    %cst = arith.constant dense<0.000000e+00> : vector<512x128xf32>
    %2 = tpu.matmul %0, %1, %cst {dimension_numbers = #tpu.dot_dimension_numbers<[1], [0], [0], [1], [0, 0, 1, 1], [], []>} : vector<512x128xbf16>, vector<128x128xbf16>, vector<512x128xf32> -> vector<512x128xf32>
    %c0_3 = arith.constant 0 : index
    %c0_4 = arith.constant 0 : index
    %3 = vector.load %arg3[%c0_3, %c0_4] : memref<1x128xf32, #tpu.memory_space<vmem>>, vector<1x128xf32>
    %4 = vector.broadcast %3 : vector<1x128xf32> to vector<512x128xf32>
    %5 = arith.addf %2, %4 : vector<512x128xf32>
    %6 = arith.truncf %5 : vector<512x128xf32> to vector<512x128xbf16>
    %c0_5 = arith.constant 0 : index
    %c0_6 = arith.constant 0 : index
    %7 = vector.load %arg4[%c0_5, %c0_6] : memref<512x128xbf16, #tpu.memory_space<vmem>>, vector<512x128xbf16>
    tpu.vector_store %arg4[%c0_5, %c0_6], %6 {strides = array<i32>} : memref<512x128xbf16, #tpu.memory_space<vmem>>, vector<512x128xbf16>,
    %cst_7 = arith.constant dense<0.000000e+00> : vector<128xf32>
    %8 = vector.multi_reduction <add>, %2, %cst_7 [0] : vector<512x128xf32> to vector<128xf32>
    %9 = vector.shape_cast %8 : vector<128xf32> to vector<1x128xf32>
    %10 = arith.mulf %2, %2 : vector<512x128xf32>
    %cst_8 = arith.constant dense<0.000000e+00> : vector<128xf32>
    %11 = vector.multi_reduction <add>, %10, %cst_8 [0] : vector<512x128xf32> to vector<128xf32>
    %12 = vector.shape_cast %11 : vector<128xf32> to vector<1x128xf32>
    %13 = vector.shape_cast %9 : vector<1x128xf32> to vector<1x1x128xf32>
    %c0_9 = arith.constant 0 : index
    %c0_10 = arith.constant 0 : index
    %c0_11 = arith.constant 0 : index
    %14 = vector.load %arg5[%c0_9, %c0_10, %c0_11] : memref<1x2x128xf32, #tpu.memory_space<vmem>>, vector<1x1x128xf32>
    tpu.vector_store %arg5[%c0_9, %c0_10, %c0_11], %13 {strides = array<i32>} : memref<1x2x128xf32, #tpu.memory_space<vmem>>, vector<1x1x128xf32>,
    %15 = vector.shape_cast %12 : vector<1x128xf32> to vector<1x1x128xf32>
    %c0_12 = arith.constant 0 : index
    %c1 = arith.constant 1 : index
    %c0_13 = arith.constant 0 : index
    %16 = vector.load %arg5[%c0_12, %c1, %c0_13] : memref<1x2x128xf32, #tpu.memory_space<vmem>>, vector<1x1x128xf32>
    tpu.vector_store %arg5[%c0_12, %c1, %c0_13], %15 {strides = array<i32>} : memref<1x2x128xf32, #tpu.memory_space<vmem>>, vector<1x1x128xf32>,
    return
  }
  func.func @transform_0(%arg0: i32) -> (i32, i32) {
    %c0_i32 = arith.constant 0 : i32
    %c0_i32_0 = arith.constant 0 : i32
    return %arg0, %c0_i32 : i32, i32
  }
  func.func @transform_1(%arg0: i32) -> (i32, i32) {
    %c0_i32 = arith.constant 0 : i32
    %c0_i32_0 = arith.constant 0 : i32
    %c0_i32_1 = arith.constant 0 : i32
    return %c0_i32, %c0_i32_0 : i32, i32
  }
  func.func @transform_2(%arg0: i32) -> (i32, i32) {
    %c0_i32 = arith.constant 0 : i32
    %c0_i32_0 = arith.constant 0 : i32
    %c0_i32_1 = arith.constant 0 : i32
    return %c0_i32, %c0_i32_0 : i32, i32
  }
  func.func @transform_3(%arg0: i32) -> (i32, i32) {
    %c0_i32 = arith.constant 0 : i32
    %c0_i32_0 = arith.constant 0 : i32
    return %arg0, %c0_i32 : i32, i32
  }
  func.func @transform_4(%arg0: i32) -> (i32, i32, i32) {
    %c0_i32 = arith.constant 0 : i32
    %c0_i32_0 = arith.constant 0 : i32
    %c0_i32_1 = arith.constant 0 : i32
    return %arg0, %c0_i32, %c0_i32_0 : i32, i32, i32
  }
}

</mosaic_0001>

<bundles_post_ra>
// kernel: tpu_custom_call.1
= control target key start
LH: loop header
LB: loop body
LE: loop exit
PB: predicated region body
PF: predicated region fallthrough
CT: control target
= control target key end

     0   :  { %10 = vsyncpa [#allocation3], 0  ;;  %s2270_s0 = inlined_call_operand.hbm [shape: bf16[512,128], index: 0, kind: input, shape index: {}]   ;;  %s2271_s1 = inlined_call_operand.hbm [shape: bf16[128,128], index: 1, kind: input, shape index: {}]   ;;  %s2272_s2 = inlined_call_operand.vmem [shape: f32[1,128], index: 2, kind: input, shape index: {}]   ;;  %s2273_s3 = inlined_call_operand.hbm [shape: bf16[512,128], index: 3, kind: output, shape index: {0}]   ;;  %s2274_s4 = inlined_call_operand.hbm [shape: f32[1,2,128], index: 4, kind: output, shape index: {1}]  }
   0x1   :  { %11 = vsyncpa [#allocation6], 0 }
   0x2   :  { %12 = vsyncpa [#allocation4], 0 }
   0x3   :  { %13 = vsyncpa [#allocation9], 0  ;;  %s1921_s15 = smov [#allocation2]   ;;  %s1825_s19 = scalar_lea.hbm %s2270_s0, 4096 }
   0x4   :  { %s19_s16 = sshll.u32 %s1921_s15, 4  ;;  %p1826_p0 = scmp.ne.s32.totalorder %s2270_s0, %s1825_s19  ;;  %s20_s16 = int_to_ptr.vmem [resolvable:$true] %s19_s16 }
   0x5   :  { %p1829_p1 = scmp.lt.u32.totalorder %s1825_s19, %s2270_s0 }
   0x7   :  { %p1831_p2 = pnand %p1829_p1, %p1826_p0 }
   0x9   :  { %1834 = shalt.err (!%p1831_p2)
}
   0xa   :  { %s1835_s24 = scalar_lea.vmem %s20_s16, 4096  ;;  %p1840_p4 = scmp.lt.s32.totalorder %s20_s16, %s20_s16 }
   0xb   :  { %p1836_p3 = scmp.ne.s32.totalorder %s20_s16, %s1835_s24  ;;  %p1841_p5 = scmp.lt.s32.totalorder %s1835_s24, %s1835_s24 }
   0xd   :  { %p1842_p6 = por %p1841_p5, %p1840_p4 }
   0xf   :  { %p1843_p7 = pnand %p1842_p6, %p1836_p3 }
  0x11   :  { %1846 = shalt.err (!%p1843_p7)
}
  0x12   :  { %s1922_s25 = smov 64   ;;  %s1923_s26 = smov 4  }
  0x13   :  { %25 = dma.hbm_to_vmem [thread:$0]  %s2270_s0, 4096, %s20_s16, [#allocation3], %s1922_s25, %s1922_s25, %s1923_s26  }
  0x14   :  { %s1924_s29 = smov [#allocation5]   ;;  %s1847_s7 = scalar_lea.hbm %s2271_s1, 1024 }
  0x15   :  { %s31_s30 = sshll.u32 %s1924_s29, 4  ;;  %p1848_p8 = scmp.ne.s32.totalorder %s2271_s1, %s1847_s7  ;;  %s32_s30 = int_to_ptr.vmem [resolvable:$true] %s31_s30 }
  0x16   :  { %p1851_p9 = scmp.lt.u32.totalorder %s1847_s7, %s2271_s1 }
  0x18   :  { %p1853_p10 = pnand %p1851_p9, %p1848_p8 }
  0x1a   :  { %1856 = shalt.err (!%p1853_p10)
}
  0x1b   :  { %s1857_s12 = scalar_lea.vmem %s32_s30, 1024  ;;  %p1862_p12 = scmp.lt.s32.totalorder %s32_s30, %s32_s30 }
  0x1c   :  { %p1858_p11 = scmp.ne.s32.totalorder %s32_s30, %s1857_s12  ;;  %p1863_p13 = scmp.lt.s32.totalorder %s1857_s12, %s1857_s12 }
  0x1e   :  { %p1864_p0 = por %p1863_p13, %p1862_p12 }
  0x20   :  { %p1865_p1 = pnand %p1864_p0, %p1858_p11 }
  0x22   :  { %1868 = shalt.err (!%p1865_p1)
}
  0x23   :  { %37 = dma.hbm_to_vmem [thread:$0]  %s2271_s1, 1024, %s32_s30, [#allocation6], %s1922_s25, %s1922_s25, %s1923_s26  }
  0x24   :  { %1913 = dma.done.wait [#allocation3], 4096  }
  0x25   :  { %1914 = vsyncadd [#allocation3], 4294963200 }
  0x26   :  { %1915 = dma.done.wait [#allocation6], 1024  }
  0x27   :  { %1916 = vsyncadd [#allocation6], 4294966272  ;;  %v1785_v0 = vld [vmem:[#allocation5] sm:$0xff]   ;;  %v1786_v1 = vld [vmem:[#allocation5 + $0x8] sm:$0xff]  }
  0x28   :  { %1683 = vmatprep.subr.bf16.mxu0 %v1785_v0  ;;  %1763 = vmatprep.subr.bf16.mxu1 %v1785_v0  ;;  %v1787_v2 = vld [vmem:[#allocation5 + $0x10] sm:$0xff]   ;;  %v1788_v3 = vld [vmem:[#allocation5 + $0x18] sm:$0xff]   ;;  %v1793_v4 = vld [vmem:[#allocation2] sm:$0xff]  }
  0x29   :  { %1684 = vmatpush3.bf16.msra.mxu0 %v1785_v0  ;;  %1771 = vmatpush3.bf16.msra.mxu1 %v1785_v0  ;;  %v1789_v5 = vld [vmem:[#allocation5 + $0x20] sm:$0xff]   ;;  %v1790_v6 = vld [vmem:[#allocation5 + $0x28] sm:$0xff]   ;;  %v1791_v7 = vld [vmem:[#allocation5 + $0x30] sm:$0xff]  }
  0x2a   :  { %1685 = vmatprep.subr.bf16.mxu0 %v1786_v1  ;;  %1764 = vmatprep.subr.bf16.mxu1 %v1786_v1  ;;  %v1792_v8 = vld [vmem:[#allocation5 + $0x38] sm:$0xff]   ;;  %v1809_v9 = vld [vmem:[#allocation2 + $0x80] sm:$0xff]   ;;  %v1794_v10 = vld [vmem:[#allocation2 + $0x8] sm:$0xff]  }
  0x2b   :  { %1699 = vmatprep.mubr.bf16.mxu0 %v1793_v4  ;;  %1731 = vmatprep.mubr.bf16.mxu1 %v1809_v9  ;;  %v1795_v11 = vld [vmem:[#allocation2 + $0x10] sm:$0xff]   ;;  %v1810_v12 = vld [vmem:[#allocation2 + $0x88] sm:$0xff]   ;;  %v1796_v14 = vld [vmem:[#allocation2 + $0x18] sm:$0xff]  }
  0x2c   :  { %v1811_v13 = vld [vmem:[#allocation2 + $0x90] sm:$0xff]   ;;  %v1797_v15 = vld [vmem:[#allocation2 + $0x20] sm:$0xff]   ;;  %v1812_v16 = vld [vmem:[#allocation2 + $0x98] sm:$0xff]  }
  0x2d   :  { %1686 = vmatpush3.bf16.msra.mxu0 %v1786_v1  ;;  %1772 = vmatpush3.bf16.msra.mxu1 %v1786_v1  ;;  %v1813_v17 = vld [vmem:[#allocation2 + $0xa0] sm:$0xff]   ;;  %v1798_v18 = vld [vmem:[#allocation2 + $0x28] sm:$0xff]   ;;  %v1799_v20 = vld [vmem:[#allocation2 + $0x30] sm:$0xff]  }
  0x2e   :  { %1687 = vmatprep.subr.bf16.mxu0 %v1787_v2  ;;  %1765 = vmatprep.subr.bf16.mxu1 %v1787_v2  ;;  %v1814_v19 = vld [vmem:[#allocation2 + $0xa8] sm:$0xff]   ;;  %v1815_v21 = vld [vmem:[#allocation2 + $0xb0] sm:$0xff]   ;;  %v1800_v22 = vld [vmem:[#allocation2 + $0x38] sm:$0xff]  }
  0x2f   :  { %v1816_v23 = vld [vmem:[#allocation2 + $0xb8] sm:$0xff]   ;;  %v1801_v24 = vld [vmem:[#allocation2 + $0x40] sm:$0xff]   ;;  %v1802_v26 = vld [vmem:[#allocation2 + $0x48] sm:$0xff]  }
  0x30   :  { %v1817_v25 = vld [vmem:[#allocation2 + $0xc0] sm:$0xff]   ;;  %v1818_v27 = vld [vmem:[#allocation2 + $0xc8] sm:$0xff]   ;;  %v1803_v28 = vld [vmem:[#allocation2 + $0x50] sm:$0xff]  }
  0x31   :  { %1688 = vmatpush3.bf16.msra.mxu0 %v1787_v2  ;;  %1773 = vmatpush3.bf16.msra.mxu1 %v1787_v2  ;;  %v1819_v29 = vld [vmem:[#allocation2 + $0xd0] sm:$0xff]   ;;  %v1804_v30 = vld [vmem:[#allocation2 + $0x58] sm:$0xff]   ;;  %v1805_v32 = vld [vmem:[#allocation2 + $0x60] sm:$0xff]  }
  0x32   :  { %1689 = vmatprep.subr.bf16.mxu0 %v1788_v3  ;;  %1766 = vmatprep.subr.bf16.mxu1 %v1788_v3  ;;  %v1820_v31 = vld [vmem:[#allocation2 + $0xd8] sm:$0xff]   ;;  %v1821_v33 = vld [vmem:[#allocation2 + $0xe0] sm:$0xff]   ;;  %v1806_v34 = vld [vmem:[#allocation2 + $0x68] sm:$0xff]  }
  0x33   :  { %v1822_v35 = vld [vmem:[#allocation2 + $0xe8] sm:$0xff]   ;;  %v1807_v36 = vld [vmem:[#allocation2 + $0x70] sm:$0xff]   ;;  %v1808_v38 = vld [vmem:[#allocation2 + $0x78] sm:$0xff]  }
  0x34   :  { %v1823_v37 = vld [vmem:[#allocation2 + $0xf0] sm:$0xff]   ;;  %v1824_v39 = vld [vmem:[#allocation2 + $0xf8] sm:$0xff]   ;;  %v1985_v40 = vld [vmem:[%s2272_s2] ss:$0 sm:$0xff]  ;;  %s1925_s2 = smov [#allocation7]  }
  0x35   :  { %1690 = vmatpush3.bf16.msra.mxu0 %v1788_v3  ;;  %1774 = vmatpush3.bf16.msra.mxu1 %v1788_v3  ;;  %s1256_s15 = sshll.u32 %s1925_s2, 4  ;;  %s1257_s15 = int_to_ptr.vmem [resolvable:$true] %s1256_s15 }
  0x36   :  { %1691 = vmatprep.subr.bf16.mxu0 %v1789_v5  ;;  %1767 = vmatprep.subr.bf16.mxu1 %v1789_v5  ;;  %s1869_s16 = scalar_lea.vmem %s1257_s15, 4096  ;;  %p1874_p3 = scmp.lt.s32.totalorder %s1257_s15, %s1257_s15 }
  0x37   :  { %p1870_p2 = scmp.ne.s32.totalorder %s1257_s15, %s1869_s16  ;;  %p1875_p4 = scmp.lt.s32.totalorder %s1869_s16, %s1869_s16 }
  0x39   :  { %1692 = vmatpush3.bf16.msra.mxu0 %v1789_v5  ;;  %1775 = vmatpush3.bf16.msra.mxu1 %v1789_v5  ;;  %p1876_p5 = por %p1875_p4, %p1874_p3 }
  0x3a   :  { %1693 = vmatprep.subr.bf16.mxu0 %v1790_v6  ;;  %1768 = vmatprep.subr.bf16.mxu1 %v1790_v6 }
  0x3b   :  { %p1877_p6 = pnand %p1876_p5, %p1870_p2 }
  0x3d   :  { %1694 = vmatpush3.bf16.msra.mxu0 %v1790_v6  ;;  %1776 = vmatpush3.bf16.msra.mxu1 %v1790_v6 }
  0x3e   :  { %1695 = vmatprep.subr.bf16.mxu0 %v1791_v7  ;;  %1769 = vmatprep.subr.bf16.mxu1 %v1791_v7 }
  0x41   :  { %1696 = vmatpush3.bf16.msra.mxu0 %v1791_v7  ;;  %1777 = vmatpush3.bf16.msra.mxu1 %v1791_v7 }
  0x42   :  { %1697 = vmatprep.subr.bf16.mxu0 %v1792_v8  ;;  %1770 = vmatprep.subr.bf16.mxu1 %v1792_v8 }
  0x45   :  { %1698 = vmatpush3.bf16.msra.mxu0 %v1792_v8  ;;  %1778 = vmatpush3.bf16.msra.mxu1 %v1792_v8 }
  0x48   :  { %1700 = vmatmul.mubr.bf16.vlgmr.msra.gmra.mrb[0].mxu0 %v1794_v10  ;;  %1732 = vmatmul.mubr.bf16.vlgmr.msra.gmra.mrb[0].mxu1 %v1810_v12 }
  0x49   :  { %1703 = vmatprep.mubr.bf16.mxu0 %v1795_v11  ;;  %1735 = vmatprep.mubr.bf16.mxu1 %v1811_v13 }
  0x50   :  { %1704 = vmatmul.mubr.bf16.gmra.mrb[4].mxu0 %v1796_v14  ;;  %1736 = vmatmul.mubr.bf16.gmra.mrb[4].mxu1 %v1812_v16 }
  0x51   :  { %1707 = vmatprep.mubr.bf16.mxu0 %v1797_v15  ;;  %1739 = vmatprep.mubr.bf16.mxu1 %v1813_v17 }
  0x58   :  { %1708 = vmatmul.mubr.bf16.gmra.mrb[8].mxu0 %v1798_v18  ;;  %1740 = vmatmul.mubr.bf16.gmra.mrb[8].mxu1 %v1814_v19 }
  0x59   :  { %1711 = vmatprep.mubr.bf16.mxu0 %v1799_v20  ;;  %1743 = vmatprep.mubr.bf16.mxu1 %v1815_v21 }
  0x60   :  { %1712 = vmatmul.mubr.bf16.gmra.mrb[12].mxu0 %v1800_v22  ;;  %1744 = vmatmul.mubr.bf16.gmra.mrb[12].mxu1 %v1816_v23 }
  0x61   :  { %1715 = vmatprep.mubr.bf16.mxu0 %v1801_v24  ;;  %1747 = vmatprep.mubr.bf16.mxu1 %v1817_v25 }
  0x68   :  { %1716 = vmatmul.mubr.bf16.gmra.mrb[16].mxu0 %v1802_v26  ;;  %1748 = vmatmul.mubr.bf16.gmra.mrb[16].mxu1 %v1818_v27 }
  0x69   :  { %1719 = vmatprep.mubr.bf16.mxu0 %v1803_v28  ;;  %1751 = vmatprep.mubr.bf16.mxu1 %v1819_v29 }
  0x70   :  { %1720 = vmatmul.mubr.bf16.gmra.mrb[20].mxu0 %v1804_v30  ;;  %1752 = vmatmul.mubr.bf16.gmra.mrb[20].mxu1 %v1820_v31 }
  0x71   :  { %1723 = vmatprep.mubr.bf16.mxu0 %v1805_v32  ;;  %1755 = vmatprep.mubr.bf16.mxu1 %v1821_v33 }
  0x78   :  { %1724 = vmatmul.mubr.bf16.gmra.mrb[24].mxu0 %v1806_v34  ;;  %1756 = vmatmul.mubr.bf16.gmra.mrb[24].mxu1 %v1822_v35 }
  0x79   :  { %1727 = vmatprep.mubr.bf16.mxu0 %v1807_v36  ;;  %1759 = vmatprep.mubr.bf16.mxu1 %v1823_v37 }
  0x80   :  { %1728 = vmatmul.mubr.bf16.gmra.mrb[28].mxu0 %v1808_v38  ;;  %1760 = vmatmul.mubr.bf16.gmra.mrb[28].mxu1 %v1824_v39 }
 0x11b   :  { %v1701_v41 = vpop.f32.mrb[0].mxu0  ;;  %v1987_v42 = vpop.f32.mrb[0].mxu1 }
 0x11c   :  { %v401_v43 = vpop.f32.mrb[1].mxu0  ;;  %v697_v44 = vadd.f32 %v1987_v42, %v1985_v40  ;;  %v1991_v45 = vpop.f32.mrb[1].mxu1  ;;  %v665_v46 = vadd.f32 %v1701_v41, %v1985_v40  ;;  %v1118_v60 = vmul.f32 %v1701_v41, %v1701_v41 }
 0x11d   :  { %v1702_v47 = vpop.f32.mrb[2].mxu0  ;;  %v695_v48 = vadd.f32 %v1985_v40, %v1991_v45  ;;  %v1996_v49 = vpop.f32.mrb[2].mxu1  ;;  %v663_v50 = vadd.f32 %v1985_v40, %v401_v43  ;;  %v1116_v51 = vmul.f32 %v401_v43, %v401_v43 }
 0x11e   :  { %v666_v52 = vadd.f32 %v1702_v47, %v1985_v40  ;;  %v404_v53 = vpop.f32.mrb[3].mxu0  ;;  %v698_v54 = vadd.f32 %v1996_v49, %v1985_v40  ;;  %v2002_v55 = vpop.f32.mrb[3].mxu1  ;;  %v1119_v3 = vmul.f32 %v1702_v47, %v1702_v47 }
 0x11f   :  { %v664_v56 = vadd.f32 %v1985_v40, %v404_v53  ;;  %v1047_v57 = vadd.f32 %v404_v53, %v401_v43  ;;  %v1117_v58 = vmul.f32 %v404_v53, %v404_v53  ;;  %v696_v59 = vadd.f32 %v1985_v40, %v2002_v55 }
 0x120   :  { %v1460_v61 = vpack.c.bf16 %v666_v52, %v665_v46  ;;  %v1540_v62 = vpack.c.bf16 %v698_v54, %v697_v44 }
 0x121   :  { %v1455_v63 = vpack.c.bf16 %v664_v56, %v663_v50  ;;  %v1048_v0 = vadd.f32 %v1701_v41, %v1047_v57  ;;  %v1180_v1 = vadd.f32 %v1117_v58, %v1116_v51  ;;  %v1535_v2 = vpack.c.bf16 %v696_v59, %v695_v48 }
 0x122   :  { %1612 = vst [vmem:[#allocation7 + $0x8] sm:$0xff] %v1460_v61   ;;  %1628 = vst [vmem:[#allocation7 + $0x88] sm:$0xff] %v1540_v62  }
 0x123   :  { %1456 = vst [vmem:[#allocation7] sm:$0xff] %v1455_v63   ;;  %v1181_v4 = vadd.f32 %v1180_v1, %v1118_v60  ;;  %v1705_v5 = vpop.f32.mrb[4].mxu0  ;;  %v1049_v6 = vadd.f32 %v1702_v47, %v1048_v0  ;;  %1627 = vst [vmem:[#allocation7 + $0x80] sm:$0xff] %v1535_v2   ;;  %v2007_v7 = vpop.f32.mrb[4].mxu1 }
 0x124   :  { %v417_v8 = vpop.f32.mrb[5].mxu0  ;;  %v2009_v9 = vpop.f32.mrb[5].mxu1  ;;  %v669_v10 = vadd.f32 %v1705_v5, %v1985_v40  ;;  %v701_v19 = vadd.f32 %v2007_v7, %v1985_v40  ;;  %v1122_v29 = vmul.f32 %v1705_v5, %v1705_v5 }
 0x125   :  { %v1050_v11 = vadd.f32 %v1049_v6, %v417_v8  ;;  %v1120_v12 = vmul.f32 %v417_v8, %v417_v8  ;;  %v1182_v13 = vadd.f32 %v1181_v4, %v1119_v3  ;;  %v1706_v14 = vpop.f32.mrb[6].mxu0  ;;  %v2012_v15 = vpop.f32.mrb[6].mxu1  ;;  %v667_v16 = vadd.f32 %v1985_v40, %v417_v8 }
 0x126   :  { %v670_v17 = vadd.f32 %v1706_v14, %v1985_v40  ;;  %v420_v18 = vpop.f32.mrb[7].mxu0  ;;  %v699_v20 = vadd.f32 %v1985_v40, %v2009_v9  ;;  %v2020_v21 = vpop.f32.mrb[7].mxu1  ;;  %v702_v27 = vadd.f32 %v2012_v15, %v1985_v40  ;;  %v1123_v35 = vmul.f32 %v1706_v14, %v1706_v14 }
 0x127   :  { %v1183_v22 = vadd.f32 %v1182_v13, %v1120_v12  ;;  %v668_v23 = vadd.f32 %v1985_v40, %v420_v18  ;;  %v1051_v24 = vadd.f32 %v1050_v11, %v420_v18  ;;  %v1121_v25 = vmul.f32 %v420_v18, %v420_v18 }
 0x128   :  { %v1470_v26 = vpack.c.bf16 %v670_v17, %v669_v10  ;;  %v700_v28 = vadd.f32 %v1985_v40, %v2020_v21  ;;  %v1550_v33 = vpack.c.bf16 %v702_v27, %v701_v19 }
 0x129   :  { %v1465_v30 = vpack.c.bf16 %v668_v23, %v667_v16  ;;  %v1052_v31 = vadd.f32 %v1705_v5, %v1051_v24  ;;  %v1184_v32 = vadd.f32 %v1183_v22, %v1121_v25 }
 0x12a   :  { %1614 = vst [vmem:[#allocation7 + $0x18] sm:$0xff] %v1470_v26   ;;  %v1545_v34 = vpack.c.bf16 %v700_v28, %v699_v20  ;;  %1630 = vst [vmem:[#allocation7 + $0x98] sm:$0xff] %v1550_v33  }
 0x12b   :  { %1613 = vst [vmem:[#allocation7 + $0x10] sm:$0xff] %v1465_v30   ;;  %v1185_v36 = vadd.f32 %v1184_v32, %v1122_v29  ;;  %v1709_v37 = vpop.f32.mrb[8].mxu0  ;;  %v1053_v38 = vadd.f32 %v1706_v14, %v1052_v31  ;;  %v2027_v39 = vpop.f32.mrb[8].mxu1 }
 0x12c   :  { %v433_v41 = vpop.f32.mrb[9].mxu0  ;;  %1629 = vst [vmem:[#allocation7 + $0x90] sm:$0xff] %v1545_v34   ;;  %v2029_v43 = vpop.f32.mrb[9].mxu1  ;;  %v673_v44 = vadd.f32 %v1709_v37, %v1985_v40  ;;  %v705_v56 = vadd.f32 %v2027_v39, %v1985_v40  ;;  %v1126_v2 = vmul.f32 %v1709_v37, %v1709_v37 }
 0x12d   :  { %v1054_v46 = vadd.f32 %v1053_v38, %v433_v41  ;;  %v1124_v47 = vmul.f32 %v433_v41, %v433_v41  ;;  %v1186_v48 = vadd.f32 %v1185_v36, %v1123_v35  ;;  %v1710_v50 = vpop.f32.mrb[10].mxu0  ;;  %v2032_v51 = vpop.f32.mrb[10].mxu1  ;;  %v671_v52 = vadd.f32 %v1985_v40, %v433_v41 }
 0x12e   :  { %v674_v53 = vadd.f32 %v1710_v50, %v1985_v40  ;;  %v436_v54 = vpop.f32.mrb[11].mxu0  ;;  %v703_v57 = vadd.f32 %v1985_v40, %v2029_v43  ;;  %v2040_v58 = vpop.f32.mrb[11].mxu1  ;;  %v706_v0 = vadd.f32 %v2032_v51, %v1985_v40  ;;  %v1127_v10 = vmul.f32 %v1710_v50, %v1710_v50 }
 0x12f   :  { %v1187_v59 = vadd.f32 %v1186_v48, %v1124_v47  ;;  %v672_v60 = vadd.f32 %v1985_v40, %v436_v54  ;;  %v1055_v61 = vadd.f32 %v1054_v46, %v436_v54  ;;  %v1125_v62 = vmul.f32 %v436_v54, %v436_v54 }
 0x130   :  { %v1480_v63 = vpack.c.bf16 %v674_v53, %v673_v44  ;;  %v704_v1 = vadd.f32 %v1985_v40, %v2040_v58  ;;  %v1560_v6 = vpack.c.bf16 %v706_v0, %v705_v56 }
 0x131   :  { %v1475_v3 = vpack.c.bf16 %v672_v60, %v671_v52  ;;  %v1056_v4 = vadd.f32 %v1709_v37, %v1055_v61  ;;  %v1188_v5 = vadd.f32 %v1187_v59, %v1125_v62 }
 0x132   :  { %1616 = vst [vmem:[#allocation7 + $0x28] sm:$0xff] %v1480_v63   ;;  %v1555_v8 = vpack.c.bf16 %v704_v1, %v703_v57  ;;  %1632 = vst [vmem:[#allocation7 + $0xa8] sm:$0xff] %v1560_v6  }
 0x133   :  { %1615 = vst [vmem:[#allocation7 + $0x20] sm:$0xff] %v1475_v3   ;;  %v1189_v11 = vadd.f32 %v1188_v5, %v1126_v2  ;;  %v1713_v12 = vpop.f32.mrb[12].mxu0  ;;  %v1057_v13 = vadd.f32 %v1710_v50, %v1056_v4  ;;  %v2047_v14 = vpop.f32.mrb[12].mxu1 }
 0x134   :  { %v449_v16 = vpop.f32.mrb[13].mxu0  ;;  %1631 = vst [vmem:[#allocation7 + $0xa0] sm:$0xff] %v1555_v8   ;;  %v2049_v17 = vpop.f32.mrb[13].mxu1  ;;  %v677_v18 = vadd.f32 %v1713_v12, %v1985_v40  ;;  %v709_v28 = vadd.f32 %v2047_v14, %v1985_v40  ;;  %v1130_v38 = vmul.f32 %v1713_v12, %v1713_v12 }
 0x135   :  { %v1058_v19 = vadd.f32 %v1057_v13, %v449_v16  ;;  %v1128_v20 = vmul.f32 %v449_v16, %v449_v16  ;;  %v1190_v22 = vadd.f32 %v1189_v11, %v1127_v10  ;;  %v1714_v23 = vpop.f32.mrb[14].mxu0  ;;  %v2052_v24 = vpop.f32.mrb[14].mxu1  ;;  %v675_v25 = vadd.f32 %v1985_v40, %v449_v16 }
 0x136   :  { %v678_v26 = vadd.f32 %v1714_v23, %v1985_v40  ;;  %v452_v27 = vpop.f32.mrb[15].mxu0  ;;  %v707_v29 = vadd.f32 %v1985_v40, %v2049_v17  ;;  %v2060_v30 = vpop.f32.mrb[15].mxu1  ;;  %v710_v36 = vadd.f32 %v2052_v24, %v1985_v40  ;;  %v1131_v50 = vmul.f32 %v1714_v23, %v1714_v23 }
 0x137   :  { %v1191_v31 = vadd.f32 %v1190_v22, %v1128_v20  ;;  %v676_v32 = vadd.f32 %v1985_v40, %v452_v27  ;;  %v1059_v33 = vadd.f32 %v1058_v19, %v452_v27  ;;  %v1129_v34 = vmul.f32 %v452_v27, %v452_v27 }
 0x138   :  { %v1490_v35 = vpack.c.bf16 %v678_v26, %v677_v18  ;;  %v708_v37 = vadd.f32 %v1985_v40, %v2060_v30  ;;  %v1570_v47 = vpack.c.bf16 %v710_v36, %v709_v28 }
 0x139   :  { %v1485_v41 = vpack.c.bf16 %v676_v32, %v675_v25  ;;  %v1060_v44 = vadd.f32 %v1713_v12, %v1059_v33  ;;  %v1192_v46 = vadd.f32 %v1191_v31, %v1129_v34 }
 0x13a   :  { %1618 = vst [vmem:[#allocation7 + $0x38] sm:$0xff] %v1490_v35   ;;  %v1565_v48 = vpack.c.bf16 %v708_v37, %v707_v29  ;;  %1634 = vst [vmem:[#allocation7 + $0xb8] sm:$0xff] %v1570_v47  }
 0x13b   :  { %1617 = vst [vmem:[#allocation7 + $0x30] sm:$0xff] %v1485_v41   ;;  %v1193_v52 = vadd.f32 %v1192_v46, %v1130_v38  ;;  %v1717_v53 = vpop.f32.mrb[16].mxu0  ;;  %v1061_v54 = vadd.f32 %v1714_v23, %v1060_v44  ;;  %v2067_v56 = vpop.f32.mrb[16].mxu1 }
 0x13c   :  { %v465_v57 = vpop.f32.mrb[17].mxu0  ;;  %1633 = vst [vmem:[#allocation7 + $0xb0] sm:$0xff] %v1565_v48   ;;  %v2069_v59 = vpop.f32.mrb[17].mxu1  ;;  %v681_v60 = vadd.f32 %v1717_v53, %v1985_v40  ;;  %v713_v5 = vadd.f32 %v2067_v56, %v1985_v40  ;;  %v1134_v20 = vmul.f32 %v1717_v53, %v1717_v53 }
 0x13d   :  { %v1062_v61 = vadd.f32 %v1061_v54, %v465_v57  ;;  %v1132_v62 = vmul.f32 %v465_v57, %v465_v57  ;;  %v1194_v63 = vadd.f32 %v1193_v52, %v1131_v50  ;;  %v1718_v0 = vpop.f32.mrb[18].mxu0  ;;  %v2072_v1 = vpop.f32.mrb[18].mxu1  ;;  %v679_v2 = vadd.f32 %v1985_v40, %v465_v57 }
 0x13e   :  { %v682_v3 = vadd.f32 %v1718_v0, %v1985_v40  ;;  %v468_v4 = vpop.f32.mrb[19].mxu0  ;;  %v711_v6 = vadd.f32 %v1985_v40, %v2069_v59  ;;  %v2080_v8 = vpop.f32.mrb[19].mxu1  ;;  %v714_v18 = vadd.f32 %v2072_v1, %v1985_v40  ;;  %v1135_v28 = vmul.f32 %v1718_v0, %v1718_v0 }
 0x13f   :  { %v1195_v10 = vadd.f32 %v1194_v63, %v1132_v62  ;;  %v680_v11 = vadd.f32 %v1985_v40, %v468_v4  ;;  %v1063_v12 = vadd.f32 %v1062_v61, %v468_v4  ;;  %v1133_v13 = vmul.f32 %v468_v4, %v468_v4 }
 0x140   :  { %v1500_v16 = vpack.c.bf16 %v682_v3, %v681_v60  ;;  %v712_v19 = vadd.f32 %v1985_v40, %v2080_v8  ;;  %v1580_v26 = vpack.c.bf16 %v714_v18, %v713_v5 }
 0x141   :  { %v1495_v22 = vpack.c.bf16 %v680_v11, %v679_v2  ;;  %v1064_v23 = vadd.f32 %v1717_v53, %v1063_v12  ;;  %v1196_v25 = vadd.f32 %v1195_v10, %v1133_v13 }
 0x142   :  { %1620 = vst [vmem:[#allocation7 + $0x48] sm:$0xff] %v1500_v16   ;;  %v1575_v27 = vpack.c.bf16 %v712_v19, %v711_v6  ;;  %1636 = vst [vmem:[#allocation7 + $0xc8] sm:$0xff] %v1580_v26  }
 0x143   :  { %1619 = vst [vmem:[#allocation7 + $0x40] sm:$0xff] %v1495_v22   ;;  %v1197_v29 = vadd.f32 %v1196_v25, %v1134_v20  ;;  %v1721_v31 = vpop.f32.mrb[20].mxu0  ;;  %v1065_v32 = vadd.f32 %v1718_v0, %v1064_v23  ;;  %v2087_v33 = vpop.f32.mrb[20].mxu1 }
 0x144   :  { %v481_v34 = vpop.f32.mrb[21].mxu0  ;;  %1635 = vst [vmem:[#allocation7 + $0xc0] sm:$0xff] %v1575_v27   ;;  %v2089_v35 = vpop.f32.mrb[21].mxu1  ;;  %v685_v36 = vadd.f32 %v1721_v31, %v1985_v40  ;;  %v717_v52 = vadd.f32 %v2087_v33, %v1985_v40  ;;  %v1138_v3 = vmul.f32 %v1721_v31, %v1721_v31 }
 0x145   :  { %v1066_v37 = vadd.f32 %v1065_v32, %v481_v34  ;;  %v1136_v38 = vmul.f32 %v481_v34, %v481_v34  ;;  %v1198_v41 = vadd.f32 %v1197_v29, %v1135_v28  ;;  %v1722_v44 = vpop.f32.mrb[22].mxu0  ;;  %v2092_v46 = vpop.f32.mrb[22].mxu1  ;;  %v683_v47 = vadd.f32 %v1985_v40, %v481_v34 }
 0x146   :  { %v686_v48 = vadd.f32 %v1722_v44, %v1985_v40  ;;  %v484_v50 = vpop.f32.mrb[23].mxu0  ;;  %v715_v53 = vadd.f32 %v1985_v40, %v2089_v35  ;;  %v2100_v54 = vpop.f32.mrb[23].mxu1  ;;  %v718_v0 = vadd.f32 %v2092_v46, %v1985_v40  ;;  %v1139_v12 = vmul.f32 %v1722_v44, %v1722_v44 }
 0x147   :  { %v1199_v57 = vadd.f32 %v1198_v41, %v1136_v38  ;;  %v684_v60 = vadd.f32 %v1985_v40, %v484_v50  ;;  %v1067_v61 = vadd.f32 %v1066_v37, %v484_v50  ;;  %v1137_v62 = vmul.f32 %v484_v50, %v484_v50 }
 0x148   :  { %v1510_v63 = vpack.c.bf16 %v686_v48, %v685_v36  ;;  %v716_v2 = vadd.f32 %v1985_v40, %v2100_v54  ;;  %v1590_v10 = vpack.c.bf16 %v718_v0, %v717_v52 }
 0x149   :  { %v1505_v4 = vpack.c.bf16 %v684_v60, %v683_v47  ;;  %v1068_v5 = vadd.f32 %v1721_v31, %v1067_v61  ;;  %v1200_v6 = vadd.f32 %v1199_v57, %v1137_v62 }
 0x14a   :  { %1622 = vst [vmem:[#allocation7 + $0x58] sm:$0xff] %v1510_v63   ;;  %v1585_v11 = vpack.c.bf16 %v716_v2, %v715_v53  ;;  %1638 = vst [vmem:[#allocation7 + $0xd8] sm:$0xff] %v1590_v10  }
 0x14b   :  { %1621 = vst [vmem:[#allocation7 + $0x50] sm:$0xff] %v1505_v4   ;;  %v1201_v13 = vadd.f32 %v1200_v6, %v1138_v3  ;;  %v1725_v16 = vpop.f32.mrb[24].mxu0  ;;  %v1069_v18 = vadd.f32 %v1722_v44, %v1068_v5  ;;  %v2107_v19 = vpop.f32.mrb[24].mxu1 }
 0x14c   :  { %v497_v20 = vpop.f32.mrb[25].mxu0  ;;  %1637 = vst [vmem:[#allocation7 + $0xd0] sm:$0xff] %v1585_v11   ;;  %v2109_v22 = vpop.f32.mrb[25].mxu1  ;;  %v689_v23 = vadd.f32 %v1725_v16, %v1985_v40  ;;  %v721_v36 = vadd.f32 %v2107_v19, %v1985_v40  ;;  %v1142_v57 = vmul.f32 %v1725_v16, %v1725_v16 }
 0x14d   :  { %v1070_v25 = vadd.f32 %v1069_v18, %v497_v20  ;;  %v1140_v26 = vmul.f32 %v497_v20, %v497_v20  ;;  %v1202_v27 = vadd.f32 %v1201_v13, %v1139_v12  ;;  %v1726_v28 = vpop.f32.mrb[26].mxu0  ;;  %v2112_v29 = vpop.f32.mrb[26].mxu1  ;;  %v687_v31 = vadd.f32 %v1985_v40, %v497_v20 }
 0x14e   :  { %v690_v32 = vadd.f32 %v1726_v28, %v1985_v40  ;;  %v500_v34 = vpop.f32.mrb[27].mxu0  ;;  %v719_v37 = vadd.f32 %v1985_v40, %v2109_v22  ;;  %v2120_v38 = vpop.f32.mrb[27].mxu1  ;;  %v722_v52 = vadd.f32 %v2112_v29, %v1985_v40  ;;  %v1143_v2 = vmul.f32 %v1726_v28, %v1726_v28 }
 0x14f   :  { %v1203_v41 = vadd.f32 %v1202_v27, %v1140_v26  ;;  %v688_v44 = vadd.f32 %v1985_v40, %v500_v34  ;;  %v1071_v47 = vadd.f32 %v1070_v25, %v500_v34  ;;  %v1141_v48 = vmul.f32 %v500_v34, %v500_v34 }
 0x150   :  { %v1520_v50 = vpack.c.bf16 %v690_v32, %v689_v23  ;;  %v720_v53 = vadd.f32 %v1985_v40, %v2120_v38  ;;  %v1600_v63 = vpack.c.bf16 %v722_v52, %v721_v36 }
 0x151   :  { %v1515_v60 = vpack.c.bf16 %v688_v44, %v687_v31  ;;  %v1072_v61 = vadd.f32 %v1725_v16, %v1071_v47  ;;  %v1204_v62 = vadd.f32 %v1203_v41, %v1141_v48 }
 0x152   :  { %1624 = vst [vmem:[#allocation7 + $0x68] sm:$0xff] %v1520_v50   ;;  %v1595_v0 = vpack.c.bf16 %v720_v53, %v719_v37  ;;  %1640 = vst [vmem:[#allocation7 + $0xe8] sm:$0xff] %v1600_v63  }
 0x153   :  { %1623 = vst [vmem:[#allocation7 + $0x60] sm:$0xff] %v1515_v60   ;;  %v1205_v3 = vadd.f32 %v1204_v62, %v1142_v57  ;;  %v1729_v4 = vpop.f32.mrb[28].mxu0  ;;  %v1073_v5 = vadd.f32 %v1726_v28, %v1072_v61  ;;  %v2127_v6 = vpop.f32.mrb[28].mxu1 }
 0x154   :  { %v513_v10 = vpop.f32.mrb[29].mxu0  ;;  %1639 = vst [vmem:[#allocation7 + $0xe0] sm:$0xff] %v1595_v0   ;;  %v2129_v11 = vpop.f32.mrb[29].mxu1  ;;  %v693_v12 = vadd.f32 %v1729_v4, %v1985_v40  ;;  %v725_v28 = vadd.f32 %v2127_v6, %v1985_v40  ;;  %v1146_v50 = vmul.f32 %v1729_v4, %v1729_v4 }
 0x155   :  { %v1074_v13 = vadd.f32 %v1073_v5, %v513_v10  ;;  %v1144_v16 = vmul.f32 %v513_v10, %v513_v10  ;;  %v1206_v18 = vadd.f32 %v1205_v3, %v1143_v2  ;;  %v1730_v20 = vpop.f32.mrb[30].mxu0  ;;  %v2132_v23 = vpop.f32.mrb[30].mxu1  ;;  %v691_v25 = vadd.f32 %v1985_v40, %v513_v10 }
 0x156   :  { %v694_v26 = vadd.f32 %v1730_v20, %v1985_v40  ;;  %v516_v27 = vpop.f32.mrb[31].mxu0  ;;  %v723_v31 = vadd.f32 %v1985_v40, %v2129_v11  ;;  %v2140_v32 = vpop.f32.mrb[31].mxu1  ;;  %v726_v47 = vadd.f32 %v2132_v23, %v1985_v40  ;;  %v1147_v62 = vmul.f32 %v1730_v20, %v1730_v20 }
 0x157   :  { %v1207_v34 = vadd.f32 %v1206_v18, %v1144_v16  ;;  %v692_v36 = vadd.f32 %v1985_v40, %v516_v27  ;;  %v1075_v37 = vadd.f32 %v1074_v13, %v516_v27  ;;  %v1145_v41 = vmul.f32 %v516_v27, %v516_v27 }
 0x158   :  { %v1530_v44 = vpack.c.bf16 %v694_v26, %v693_v12  ;;  %v724_v48 = vadd.f32 %v1985_v40, %v2140_v32  ;;  %v1610_v60 = vpack.c.bf16 %v726_v47, %v725_v28  ;;  %v1148_v2 = vmul.f32 %v1991_v45, %v1991_v45 }
 0x159   :  { %v1525_v52 = vpack.c.bf16 %v692_v36, %v691_v25  ;;  %v1076_v53 = vadd.f32 %v1729_v4, %v1075_v37  ;;  %v1208_v57 = vadd.f32 %v1207_v34, %v1145_v41 }
 0x15a   :  { %1626 = vst [vmem:[#allocation7 + $0x78] sm:$0xff] %v1530_v44   ;;  %v1605_v61 = vpack.c.bf16 %v724_v48, %v723_v31  ;;  %1642 = vst [vmem:[#allocation7 + $0xf8] sm:$0xff] %v1610_v60  }
 0x15b   :  { %1625 = vst [vmem:[#allocation7 + $0x70] sm:$0xff] %v1525_v52   ;;  %v1209_v63 = vadd.f32 %v1208_v57, %v1146_v50  ;;  %v1077_v0 = vadd.f32 %v1730_v20, %v1076_v53 }
 0x15c   :  { %1641 = vst [vmem:[#allocation7 + $0xf0] sm:$0xff] %v1605_v61  }
 0x15d   :  { %v1078_v3 = vadd.f32 %v1077_v0, %v1991_v45  ;;  %v1210_v40 = vadd.f32 %v1209_v63, %v1147_v62 }
 0x15e   :  { %1880 = shalt.err (!%p1877_p6)
}
 0x15f   :  { %s1881_s19 = scalar_lea.hbm %s2273_s3, 4096 }
 0x160   :  { %p1882_p7 = scmp.ne.s32.totalorder %s2273_s3, %s1881_s19  ;;  %p1885_p8 = scmp.lt.u32.totalorder %s1881_s19, %s2273_s3 }
 0x162   :  { %p1887_p9 = pnand %p1885_p8, %p1882_p7 }
 0x164   :  { %1890 = shalt.err (!%p1887_p9)
}
 0x165   :  { %1262 = dma.vmem_to_hbm [thread:$0]  %s1257_s15, 4096, %s2273_s3, [#allocation4], %s1922_s25, %s1922_s25, %s1923_s26   ;;  %v1211_v45 = vadd.f32 %v1210_v40, %v1148_v2  ;;  %v1079_v4 = vadd.f32 %v1078_v3, %v2002_v55  ;;  %v1149_v5 = vmul.f32 %v2002_v55, %v2002_v55  ;;  %v1150_v10 = vmul.f32 %v1987_v42, %v1987_v42 }
 0x166   :  { %v1151_v16 = vmul.f32 %v1996_v49, %v1996_v49  ;;  %v1152_v25 = vmul.f32 %v2009_v9, %v2009_v9  ;;  %v1153_v31 = vmul.f32 %v2020_v21, %v2020_v21  ;;  %v1157_v50 = vmul.f32 %v2040_v58, %v2040_v58  ;;  %s1926_s3 = smov [#allocation8]  }
 0x167   :  { %v1080_v12 = vadd.f32 %v1987_v42, %v1079_v4  ;;  %v1212_v13 = vadd.f32 %v1211_v45, %v1149_v5  ;;  %v1154_v42 = vmul.f32 %v2007_v7, %v2007_v7  ;;  %v1161_v0 = vmul.f32 %v2060_v30, %v2060_v30  ;;  %s1269_s25 = sshll.u32 %s1926_s3, 4  ;;  %s1270_s25 = int_to_ptr.vmem [resolvable:$true] %s1269_s25 }
 0x168   :  { %s1891_s26 = scalar_lea.vmem %s1270_s25, 32  ;;  %p1896_p11 = scmp.lt.s32.totalorder %s1270_s25, %s1270_s25 }
 0x169   :  { %v1213_v18 = vadd.f32 %v1212_v13, %v1150_v10  ;;  %v1081_v20 = vadd.f32 %v1996_v49, %v1080_v12  ;;  %v1155_v49 = vmul.f32 %v2012_v15, %v2012_v15  ;;  %v1165_v12 = vmul.f32 %v2080_v8, %v2080_v8  ;;  %p1892_p10 = scmp.ne.s32.totalorder %s1270_s25, %s1891_s26  ;;  %p1897_p12 = scmp.lt.s32.totalorder %s1891_s26, %s1891_s26 }
 0x16b   :  { %v1082_v26 = vadd.f32 %v1081_v20, %v2009_v9  ;;  %v1214_v27 = vadd.f32 %v1213_v18, %v1151_v16  ;;  %v1156_v9 = vmul.f32 %v2029_v43, %v2029_v43  ;;  %p1898_p13 = por %p1897_p12, %p1896_p11 }
 0x16d   :  { %v1215_v28 = vadd.f32 %v1214_v27, %v1152_v25  ;;  %v1083_v55 = vadd.f32 %v1082_v26, %v2020_v21  ;;  %p1899_p0 = pnand %p1898_p13, %p1892_p10 }
 0x16f   :  { %v1084_v34 = vadd.f32 %v2007_v7, %v1083_v55  ;;  %v1216_v36 = vadd.f32 %v1215_v28, %v1153_v31  ;;  %v1158_v7 = vmul.f32 %v2027_v39, %v2027_v39  ;;  %v1169_v28 = vmul.f32 %v2100_v54, %v2100_v54 }
 0x171   :  { %v1217_v37 = vadd.f32 %v1216_v36, %v1154_v42  ;;  %v1085_v41 = vadd.f32 %v2012_v15, %v1084_v34  ;;  %v1159_v15 = vmul.f32 %v2032_v51, %v2032_v51 }
 0x173   :  { %v1086_v44 = vadd.f32 %v1085_v41, %v2029_v43  ;;  %v1218_v47 = vadd.f32 %v1217_v37, %v1155_v49  ;;  %v1160_v43 = vmul.f32 %v2049_v17, %v2049_v17  ;;  %v1173_v41 = vmul.f32 %v2120_v38, %v2120_v38 }
 0x175   :  { %v1219_v48 = vadd.f32 %v1218_v47, %v1156_v9  ;;  %v1087_v21 = vadd.f32 %v1086_v44, %v2040_v58 }
 0x177   :  { %v1088_v52 = vadd.f32 %v2027_v39, %v1087_v21  ;;  %v1220_v53 = vadd.f32 %v1219_v48, %v1157_v50  ;;  %v1162_v39 = vmul.f32 %v2047_v14, %v2047_v14 }
 0x179   :  { %v1221_v57 = vadd.f32 %v1220_v53, %v1158_v7  ;;  %v1089_v60 = vadd.f32 %v2032_v51, %v1088_v52  ;;  %v1163_v51 = vmul.f32 %v2052_v24, %v2052_v24  ;;  %v1177_v52 = vmul.f32 %v2140_v32, %v2140_v32 }
 0x17b   :  { %v1090_v61 = vadd.f32 %v1089_v60, %v2049_v17  ;;  %v1222_v62 = vadd.f32 %v1221_v57, %v1159_v15  ;;  %v1164_v17 = vmul.f32 %v2069_v59, %v2069_v59 }
 0x17d   :  { %v1223_v63 = vadd.f32 %v1222_v62, %v1160_v43  ;;  %v1091_v58 = vadd.f32 %v1090_v61, %v2060_v30 }
 0x17f   :  { %v1092_v2 = vadd.f32 %v2047_v14, %v1091_v58  ;;  %v1224_v3 = vadd.f32 %v1223_v63, %v1161_v0  ;;  %v1166_v14 = vmul.f32 %v2067_v56, %v2067_v56 }
 0x181   :  { %v1225_v40 = vadd.f32 %v1224_v3, %v1162_v39  ;;  %v1093_v45 = vadd.f32 %v2052_v24, %v1092_v2  ;;  %v1167_v24 = vmul.f32 %v2072_v1, %v2072_v1 }
 0x183   :  { %v1094_v4 = vadd.f32 %v1093_v45, %v2069_v59  ;;  %v1226_v5 = vadd.f32 %v1225_v40, %v1163_v51  ;;  %v1168_v59 = vmul.f32 %v2089_v35, %v2089_v35 }
 0x185   :  { %v1227_v10 = vadd.f32 %v1226_v5, %v1164_v17  ;;  %v1095_v30 = vadd.f32 %v1094_v4, %v2080_v8 }
 0x187   :  { %v1096_v13 = vadd.f32 %v2067_v56, %v1095_v30  ;;  %v1228_v16 = vadd.f32 %v1227_v10, %v1165_v12  ;;  %v1170_v56 = vmul.f32 %v2087_v33, %v2087_v33 }
 0x189   :  { %v1229_v18 = vadd.f32 %v1228_v16, %v1166_v14  ;;  %v1097_v20 = vadd.f32 %v2072_v1, %v1096_v13  ;;  %v1171_v1 = vmul.f32 %v2092_v46, %v2092_v46 }
 0x18b   :  { %v1098_v25 = vadd.f32 %v1097_v20, %v2089_v35  ;;  %v1230_v26 = vadd.f32 %v1229_v18, %v1167_v24  ;;  %v1172_v35 = vmul.f32 %v2109_v22, %v2109_v22 }
 0x18d   :  { %v1231_v27 = vadd.f32 %v1230_v26, %v1168_v59  ;;  %v1099_v8 = vadd.f32 %v1098_v25, %v2100_v54 }
 0x18f   :  { %v1100_v55 = vadd.f32 %v2087_v33, %v1099_v8  ;;  %v1232_v31 = vadd.f32 %v1231_v27, %v1169_v28  ;;  %v1174_v33 = vmul.f32 %v2107_v19, %v2107_v19 }
 0x191   :  { %v1233_v42 = vadd.f32 %v1232_v31, %v1170_v56  ;;  %v1101_v34 = vadd.f32 %v2092_v46, %v1100_v55  ;;  %v1175_v46 = vmul.f32 %v2112_v29, %v2112_v29 }
 0x193   :  { %v1102_v36 = vadd.f32 %v1101_v34, %v2109_v22  ;;  %v1234_v49 = vadd.f32 %v1233_v42, %v1171_v1  ;;  %v1176_v22 = vmul.f32 %v2129_v11, %v2129_v11 }
 0x195   :  { %v1235_v37 = vadd.f32 %v1234_v49, %v1172_v35  ;;  %v1103_v54 = vadd.f32 %v1102_v36, %v2120_v38 }
 0x197   :  { %v1104_v9 = vadd.f32 %v2107_v19, %v1103_v54  ;;  %v1236_v44 = vadd.f32 %v1235_v37, %v1173_v41  ;;  %v1178_v19 = vmul.f32 %v2127_v6, %v2127_v6 }
 0x199   :  { %v1237_v47 = vadd.f32 %v1236_v44, %v1174_v33  ;;  %v1105_v48 = vadd.f32 %v2112_v29, %v1104_v9  ;;  %v1179_v29 = vmul.f32 %v2132_v23, %v2132_v23 }
 0x19b   :  { %v1106_v21 = vadd.f32 %v1105_v48, %v2129_v11  ;;  %v1238_v50 = vadd.f32 %v1237_v47, %v1175_v46 }
 0x19d   :  { %v1239_v7 = vadd.f32 %v1238_v50, %v1176_v22  ;;  %v1107_v38 = vadd.f32 %v1106_v21, %v2140_v32 }
 0x19f   :  { %v1108_v53 = vadd.f32 %v2127_v6, %v1107_v38  ;;  %v1240_v15 = vadd.f32 %v1239_v7, %v1177_v52 }
 0x1a1   :  { %v1109_v57 = vadd.f32 %v2132_v23, %v1108_v53  ;;  %v1241_v60 = vadd.f32 %v1240_v15, %v1178_v19 }
 0x1a3   :  { %v1110_v11 = vrot.slane %v1109_v57, 4  ;;  %v1242_v43 = vadd.f32 %v1241_v60, %v1179_v29 }
 0x1a5   :  { %v1111_v61 = vadd.f32 %v1110_v11, %v1109_v57  ;;  %v1243_v62 = vrot.slane %v1242_v43, 4 }
 0x1a7   :  { %v1112_v63 = vrot.slane %v1111_v61, 2  ;;  %v1244_v58 = vadd.f32 %v1243_v62, %v1242_v43 }
 0x1a9   :  { %v1113_v0 = vadd.f32 %v1112_v63, %v1111_v61  ;;  %v1245_v32 = vrot.slane %v1244_v58, 2 }
 0x1ab   :  { %v1114_v39 = vrot.slane %v1113_v0, 1  ;;  %v1246_v2 = vadd.f32 %v1245_v32, %v1244_v58 }
 0x1ad   :  { %v1115_v6 = vadd.f32 %v1114_v39, %v1113_v0  ;;  %v1247_v3 = vrot.slane %v1246_v2, 1 }
 0x1af   :  { %v1248_v51 = vadd.f32 %v1247_v3, %v1246_v2  ;;  %1249 = vst [vmem:[#allocation8] sm:$0x1] %v1115_v6 }
 0x1b1   :  { %1250 = vst [vmem:[#allocation8 + $0x1] sm:$0x1] %v1248_v51 }
 0x1b2   :  { %1902 = shalt.err (!%p1899_p0)
}
 0x1b3   :  { %s1903_s30 = scalar_lea.hbm %s2274_s4, 32 }
 0x1b4   :  { %p1904_p1 = scmp.ne.s32.totalorder %s2274_s4, %s1903_s30  ;;  %p1907_p2 = scmp.lt.u32.totalorder %s1903_s30, %s2274_s4 }
 0x1b6   :  { %p1909_p3 = pnand %p1907_p2, %p1904_p1 }
 0x1b8   :  { %1912 = shalt.err (!%p1909_p3)
}
 0x1b9   :  { %1272 = dma.vmem_to_hbm [thread:$0]  %s1270_s25, 32, %s2274_s4, [#allocation9]  }
 0x1ba   :  { %1917 = dma.done.wait [#allocation4], 4096  }
 0x1bb   :  { %1918 = vsyncadd [#allocation4], 4294963200 }
 0x1bc   :  { %1919 = dma.done.wait [#allocation9], 32  }
 0x1bd   :  { %1920 = vsyncadd [#allocation9], 4294967264 }
 0x1be   :  { %1279 = vsyncpa [#allocation3], 1 }
 0x1bf   :  { %1280 = vsyncpa [#allocation6], 1 }
 0x1c0   :  { %1281 = vsyncpa [#allocation4], 1 }
 0x1c1   :  { %1282 = vsyncpa [#allocation9], 1 }

</bundles_post_ra>
